<compile_context>
chip_gen: v7x
topology: tpu7x:2x2x1
jax: 0.10.0
libtpu: 0.0.40
codegen_flags: <defaults>
</compile_context>

<pallas_src>
import functools

import jax
import jax.numpy as jnp
from jax import lax
from jax.experimental import pallas as pl
from jax.experimental.pallas import tpu as pltpu


# --------------------------------------------------------------------------
# Kernel
# --------------------------------------------------------------------------

def _charbonnier_kernel(x_ref, y_ref, acc_ref, *, eps_sq, n_valid,
                        block_rows, lane, has_pad):
    i = pl.program_id(0)

    @pl.when(i == 0)
    def _init():
        acc_ref[...] = jnp.zeros_like(acc_ref)

    # Upcast in-kernel (inputs may be bf16): cheap VPU cast, keeps HBM traffic
    # at the native width.
    x = x_ref[...].astype(jnp.float32)
    y = y_ref[...].astype(jnp.float32)
    d = x - y
    val = jnp.sqrt(d * d + jnp.float32(eps_sq))

    if has_pad:
        # Tail zero-padding lives entirely in the last grid block; mask it
        # there with an in-kernel iota (padding never reaches the sum).
        nb = pl.num_programs(0)

        @pl.when(i < nb - 1)
        def _body():
            acc_ref[...] += jnp.sum(val, axis=0, keepdims=True)

        @pl.when(i == nb - 1)
        def _tail():
            # flat element index; int32 is sufficient for realistic loss sizes.
            row = lax.broadcasted_iota(jnp.int32, (block_rows, lane), 0)
            col = lax.broadcasted_iota(jnp.int32, (block_rows, lane), 1)
            flat = (i * block_rows + row) * lane + col
            masked = jnp.where(flat < n_valid, val, 0.0)
            acc_ref[...] += jnp.sum(masked, axis=0, keepdims=True)
    else:
        acc_ref[...] += jnp.sum(val, axis=0, keepdims=True)


# --------------------------------------------------------------------------
# Layout selection + wrapper
# --------------------------------------------------------------------------

def _choose_layout(n, max_block_elems=512 * 1024):
    """Pick (lane, block_rows, grid, padded_rows) for a length-n flat tensor.

    Prefers a lane width (multiple of 128) that divides n and a block height
    that divides the row count so no padding copy is needed; otherwise pads
    the tail with zeros (masked in-kernel).  Per-operand block is capped at
    max_block_elems (2 MiB as f32) so double-buffering two operands stays
    within ~8 MiB of VMEM on every generation (v5e/v6e/v7x).
    """
    lane = 512
    for cand in (1024, 512, 256, 128):
        if n % cand == 0 and (n // cand) % 8 == 0:
            lane = cand
            break
    rows = max(8, (-(-n // lane) + 7) // 8 * 8)        # ceil rows, sublane (8) multiple
    cap = max(8, max_block_elems // lane // 8 * 8)     # rows per block cap
    block_rows = min(cap, rows)
    if rows % block_rows:
        # Prefer a full-block divisor of rows (>= cap/2) to avoid tail padding.
        d = block_rows
        lo = max(8, block_rows // 2)
        while d >= lo and rows % d:
            d -= 8
        if d >= lo:
            block_rows = d
    grid = -(-rows // block_rows)
    return lane, block_rows, grid, grid * block_rows


def charbonnier_loss(x, y, eps=1e-6):
    """Charbonnier loss: mean(sqrt((x - y)^2 + eps^2)) over all elements."""
    if x.size != y.size:
        raise ValueError("x and y must have the same number of elements")
    n = int(x.size)
    lane, block_rows, grid, rows_p = _choose_layout(n)
    padded = rows_p * lane
    has_pad = padded > n

    def prep(a):
        a = a.reshape(-1)
        if has_pad:
            a = jnp.pad(a, (0, padded - n))            # zeros; masked in-kernel
        return a.reshape(rows_p, lane)

    kernel = functools.partial(
        _charbonnier_kernel, eps_sq=float(eps) ** 2, n_valid=n,
        block_rows=block_rows, lane=lane, has_pad=has_pad)

    partial_sums = pl.pallas_call(
        kernel,
        out_shape=jax.ShapeDtypeStruct((1, lane), jnp.float32),
        grid=(grid,),
        in_specs=[pl.BlockSpec((block_rows, lane), lambda i: (i, 0)),
                  pl.BlockSpec((block_rows, lane), lambda i: (i, 0))],
        # Constant index map -> accumulator stays resident across the grid.
        out_specs=pl.BlockSpec((1, lane), lambda i: (0, 0)),
        compiler_params=pltpu.CompilerParams(
            dimension_semantics=("arbitrary",),         # carried accumulator
            vmem_limit_bytes=32 * 1024 * 1024),
    )(prep(x), prep(y))

    # Final 128-wide lane reduction + normalization: one tiny XLA op.
    return jnp.sum(partial_sums) / jnp.float32(n)


# --------------------------------------------------------------------------
# Example run
# --------------------------------------------------------------------------

if __name__ == "__main__":
    eps = 1e-6

    def ref_loss(a, b):
        af = a.astype(jnp.float32).reshape(-1)
        bf = b.astype(jnp.float32).reshape(-1)
        d = af - bf
        return jnp.mean(jnp.sqrt(d * d + jnp.float32(eps * eps)))

    key = jax.random.PRNGKey(0)
    k1, k2, k3, k4 = jax.random.split(key, 4)

    loss_fn = jax.jit(functools.partial(charbonnier_loss, eps=eps))

    # Primary test: (B, C, H, W) = (2, 4, 16, 16), float32.
    x = jax.random.normal(k1, (2, 4, 16, 16), jnp.float32)
    y = jax.random.normal(k2, (2, 4, 16, 16), jnp.float32)
    out = jax.block_until_ready(loss_fn(x, y))
    assert bool(jnp.isfinite(out))
    assert jnp.allclose(out, ref_loss(x, y), rtol=1e-4, atol=1e-6), (out, ref_loss(x, y))

    # Larger test: exercises the multi-step grid / accumulator path (f32 + bf16).
    xb = jax.random.normal(k3, (4, 3, 256, 256), jnp.float32)
    yb = xb + 0.05 * jax.random.normal(k4, (4, 3, 256, 256), jnp.float32)
    out32 = jax.block_until_ready(loss_fn(xb, yb))
    assert jnp.allclose(out32, ref_loss(xb, yb), rtol=2e-4, atol=1e-6), (out32, ref_loss(xb, yb))

    xb16, yb16 = xb.astype(jnp.bfloat16), yb.astype(jnp.bfloat16)
    out16 = jax.block_until_ready(loss_fn(xb16, yb16))
    assert jnp.allclose(out16, ref_loss(xb16, yb16), rtol=1e-3, atol=1e-5), \
        (out16, ref_loss(xb16, yb16))

    print("KERNEL_OK")
</pallas_src>

<mosaic_0001>
module attributes {stable_mosaic.version = 11 : i64} {
  func.func @_charbonnier_kernel(%arg0: i32, %arg1: memref<8x256xf32, #tpu.memory_space<vmem>>, %arg2: memref<8x256xf32, #tpu.memory_space<vmem>>, %arg3: memref<1x256xf32, #tpu.memory_space<vmem>>) attributes {dimension_semantics = [#tpu.dimension_semantics<arbitrary>], iteration_bounds = array<i64: 1>, scalar_prefetch = 0 : i64, scratch_operands = 0 : i64, tpu.core_type = #tpu.core_type<tc>, window_params = [{transform_indices = @transform_0, window_bounds = array<i64: 8, 256>}, {transform_indices = @transform_1, window_bounds = array<i64: 8, 256>}, {pipeline_mode = #tpu.pipeline_mode<synchronous>, transform_indices = @transform_2, window_bounds = array<i64: 1, 256>}]} {
    %c0_i32 = arith.constant 0 : i32
    %0 = arith.cmpi eq, %arg0, %c0_i32 : i32
    %1 = arith.extui %0 : i1 to i32
    %c0_i32_0 = arith.constant 0 : i32
    %2 = arith.cmpi ne, %1, %c0_i32_0 : i32
    scf.if %2 {
      %cst_9 = arith.constant 0.000000e+00 : f32
      %15 = vector.broadcast %cst_9 : f32 to vector<1x256xf32>
      %c0_10 = arith.constant 0 : index
      %c0_11 = arith.constant 0 : index
      %16 = vector.load %arg3[%c0_10, %c0_11] : memref<1x256xf32, #tpu.memory_space<vmem>>, vector<1x256xf32>
      tpu.vector_store %arg3[%c0_10, %c0_11], %15 {strides = array<i32>} : memref<1x256xf32, #tpu.memory_space<vmem>>, vector<1x256xf32>,
    } else {
    }
    %c0 = arith.constant 0 : index
    %c0_1 = arith.constant 0 : index
    %3 = vector.load %arg1[%c0, %c0_1] : memref<8x256xf32, #tpu.memory_space<vmem>>, vector<8x256xf32>
    %c0_2 = arith.constant 0 : index
    %c0_3 = arith.constant 0 : index
    %4 = vector.load %arg2[%c0_2, %c0_3] : memref<8x256xf32, #tpu.memory_space<vmem>>, vector<8x256xf32>
    %5 = arith.subf %3, %4 : vector<8x256xf32>
    %6 = arith.mulf %5, %5 : vector<8x256xf32>
    %cst = arith.constant 9.99999996E-13 : f32
    %7 = vector.broadcast %cst : f32 to vector<8x256xf32>
    %8 = arith.addf %6, %7 : vector<8x256xf32>
    %9 = math.sqrt %8 : vector<8x256xf32>
    %c0_4 = arith.constant 0 : index
    %c0_5 = arith.constant 0 : index
    %10 = vector.load %arg3[%c0_4, %c0_5] : memref<1x256xf32, #tpu.memory_space<vmem>>, vector<1x256xf32>
    %cst_6 = arith.constant dense<0.000000e+00> : vector<256xf32>
    %11 = vector.multi_reduction <add>, %9, %cst_6 [0] : vector<8x256xf32> to vector<256xf32>
    %12 = vector.shape_cast %11 : vector<256xf32> to vector<1x256xf32>
    %13 = arith.addf %10, %12 : vector<1x256xf32>
    %c0_7 = arith.constant 0 : index
    %c0_8 = arith.constant 0 : index
    %14 = vector.load %arg3[%c0_7, %c0_8] : memref<1x256xf32, #tpu.memory_space<vmem>>, vector<1x256xf32>
    tpu.vector_store %arg3[%c0_7, %c0_8], %13 {strides = array<i32>} : memref<1x256xf32, #tpu.memory_space<vmem>>, vector<1x256xf32>,
    return
  }
  func.func @transform_0(%arg0: i32) -> (i32, i32) {
    %c0_i32 = arith.constant 0 : i32
    %c0_i32_0 = arith.constant 0 : i32
    return %arg0, %c0_i32 : i32, i32
  }
  func.func @transform_1(%arg0: i32) -> (i32, i32) {
    %c0_i32 = arith.constant 0 : i32
    %c0_i32_0 = arith.constant 0 : i32
    return %arg0, %c0_i32 : i32, i32
  }
  func.func @transform_2(%arg0: i32) -> (i32, i32) {
    %c0_i32 = arith.constant 0 : i32
    %c0_i32_0 = arith.constant 0 : i32
    %c0_i32_1 = arith.constant 0 : i32
    return %c0_i32, %c0_i32_0 : i32, i32
  }
}

</mosaic_0001>

<bundles_post_ra>
// kernel: charbonnier_loss.1
= control target key start
LH: loop header
LB: loop body
LE: loop exit
PB: predicated region body
PF: predicated region fallthrough
CT: control target
= control target key end

     0   :  { %v15_v0 = vlaneseq  ;;  %v91_v7 = vmov 0.0   ;;  %v92_v27 = vmov 1966171168   ;;  %s137_s0 = inlined_call_operand.vmem [shape: f32[8,256], index: 0, kind: input, shape index: {}]   ;;  %s138_s1 = inlined_call_operand.vmem [shape: f32[8,256], index: 1, kind: input, shape index: {}]   ;;  %s139_s2 = inlined_call_operand.vmem [shape: f32[1,256], index: 2, kind: output, shape index: {}]  }
   0x1   :  { %v20_v1 = vld [vmem:[%s137_s0] sm:$0xff]  ;;  %v21_v2 = vld [vmem:[%s137_s0 + $0x8] sm:$0xff]  ;;  %v61_v28 = vunpack.c.l.s4 %v92_v27 }
   0x2   :  { %v22_v3 = vld [vmem:[%s138_s1] sm:$0xff]  ;;  %vm117_vm0 = vcmp.lt.s32.totalorder %v15_v0, 256  ;;  %v23_v5 = vld [vmem:[%s138_s1 + $0x8] sm:$0xff]  ;;  %v64_v34 = vshrl.u32 %v15_v0, 7 }
   0x3   :  { %v24_v6 = vsub.f32 %v20_v1, %v22_v3  ;;  %19 = vst.msk [vmem:[%s139_s2] sm:$0x3] %vm117_vm0, %v91_v7  ;;  %v25_v8 = vsub.f32 %v21_v2, %v23_v5  ;;  %v62_v33 = vunpack.c.0.s8 %v61_v28 }
   0x5   :  { %v26_v9 = vmul.f32 %v24_v6, %v24_v6  ;;  %v27_v10 = vmul.f32 %v25_v8, %v25_v8  ;;  %v65_v39 = vsub.s32 %v62_v33, %v64_v34 }
   0x7   :  { %v28_v11 = vadd.f32 1e-12, %v26_v9  ;;  %v29_v12 = vadd.f32 1e-12, %v27_v10 }
   0x9   :  { %87 = vrsqrt.f32 %v28_v11  ;;  %vm32_vm1 = vcmp.eq.f32.partialorder %v28_v11, inf  ;;  %v35_v14 = vand.u32 2147483648, %v28_v11  ;;  %vm34_vm2 = vcmp.eq.f32.partialorder %v28_v11, 0.0 }
   0xa   :  { %89 = vrsqrt.f32 %v29_v12  ;;  %vm39_vm3 = vcmp.eq.f32.partialorder %v29_v12, inf  ;;  %v42_v17 = vand.u32 2147483648, %v29_v12  ;;  %vm41_vm4 = vcmp.eq.f32.partialorder %v29_v12, 0.0  ;;  %v44_v42 = vld [vmem:[%s139_s2] sm:$0x3] }
  0x13   :  { %v88_v13 = vpop.eup %87 }
  0x14   :  { %v90_v15 = vpop.eup %89  ;;  %v31_v16 = vmul.f32 %v88_v13, %v28_v11 }
  0x15   :  { %v38_v18 = vmul.f32 %v90_v15, %v29_v12 }
  0x16   :  { %v33_v19 = vsel %vm32_vm1, %v28_v11, %v31_v16 }
  0x17   :  { %v36_v20 = vsel %vm34_vm2, %v35_v14, %v33_v19  ;;  %v40_v21 = vsel %vm39_vm3, %v29_v12, %v38_v18 }
  0x18   :  { %v43_v22 = vsel %vm41_vm4, %v42_v17, %v40_v21  ;;  %v45_v23 = vrot.slane %v36_v20, 4 }
  0x19   :  { %v51_v24 = vrot.slane %v43_v22, 4 }
  0x1a   :  { %v46_v25 = vadd.f32 %v45_v23, %v36_v20 }
  0x1b   :  { %v52_v26 = vadd.f32 %v51_v24, %v43_v22 }
  0x1c   :  { %v47_v29 = vrot.slane %v46_v25, 2 }
  0x1d   :  { %v53_v30 = vrot.slane %v52_v26, 2 }
  0x1e   :  { %v48_v31 = vadd.f32 %v47_v29, %v46_v25 }
  0x1f   :  { %v54_v32 = vadd.f32 %v53_v30, %v52_v26 }
  0x20   :  { %v49_v35 = vrot.slane %v48_v31, 1 }
  0x21   :  { %v55_v36 = vrot.slane %v54_v32, 1 }
  0x22   :  { %v50_v37 = vadd.f32 %v49_v35, %v48_v31 }
  0x23   :  { %v56_v38 = vadd.f32 %v55_v36, %v54_v32 }
  0x25   :  { %v59_v40 = vcombine.low %v50_v37, %v56_v38 }
  0x27   :  { %v66_v41 = vrot.slane %v59_v40, %v65_v39 }
  0x29   :  { %v73_v43 = vrot.slane %v66_v41, %v65_v39 }
  0x2b   :  { %v75_v44 = vadd.f32 %v73_v43, %v44_v42 }
  0x2d   :  { %80 = vst.msk [vmem:[%s139_s2] sm:$0x3] %vm117_vm0, %v75_v44 }

</bundles_post_ra>
